<compile_context>
chip_gen: v6e
topology: v6e:2x2x1
jax: 0.10.0
libtpu: 0.0.40
codegen_flags: <defaults>
</compile_context>

<pallas_src>
import jax
import jax.numpy as jnp
from jax.experimental import pallas as pl
from jax.experimental.pallas import tpu as pltpu


def _linear_dqn_kernel(x_ref, w1_ref, b1_ref, w2_ref, b2_ref, out_ref):
    # Hidden layer: h = relu(x @ W1 + b1)   (MXU matmul, f32 accumulation)
    h = jnp.dot(x_ref[...], w1_ref[...], preferred_element_type=jnp.float32)
    h = jnp.maximum(h + b1_ref[...].astype(jnp.float32), 0.0)
    # Output layer: y = h @ W2 + b2  (keep the f32 accumulator; mixed-precision
    # dot handles bf16 weights without truncating h)
    y = jnp.dot(h, w2_ref[...], preferred_element_type=jnp.float32)
    out_ref[...] = (y + b2_ref[...].astype(jnp.float32)).astype(out_ref.dtype)


def _round_up(n: int, m: int) -> int:
    return ((n + m - 1) // m) * m


def prepare_linear_dqn_params(w1, b1, w2, b2):
    """One-time parameter prep: lane-align hidden/output dims to 128.

    w1: (input_n, hidden_n), b1: (1, hidden_n) or (hidden_n,)
    w2: (hidden_n, output_n), b2: (1, output_n) or (output_n,)
    Returns a dict of padded params + original logical dims.  Call this once at
    model init / after each weight update, NOT per forward call.
    """
    input_n, hidden_n = w1.shape
    hidden_n2, output_n = w2.shape
    assert hidden_n == hidden_n2
    dtype = w1.dtype

    hid_p = _round_up(hidden_n, 128)
    out_p = _round_up(output_n, 128)

    w1_p = jnp.zeros((input_n, hid_p), dtype).at[:, :hidden_n].set(w1)
    b1_p = jnp.zeros((1, hid_p), dtype).at[:, :hidden_n].set(
        jnp.reshape(b1, (1, hidden_n)))
    w2_p = jnp.zeros((hid_p, out_p), dtype).at[:hidden_n, :output_n].set(w2)
    b2_p = jnp.zeros((1, out_p), dtype).at[:, :output_n].set(
        jnp.reshape(b2, (1, output_n)))

    return {
        "w1": w1_p, "b1": b1_p, "w2": w2_p, "b2": b2_p,
        "input_n": input_n, "hidden_n": hidden_n, "output_n": output_n,
    }


def linear_dqn_forward(x, params, *, block_batch: int = 512):
    """Fused forward pass of LinearDQN.

    x      : (B, input_n)  float32
    params : output of prepare_linear_dqn_params
    returns: (B, output_n)
    """
    B, input_n = x.shape
    assert input_n == params["input_n"], "x feature dim mismatch"
    w1_p, b1_p = params["w1"], params["b1"]
    w2_p, b2_p = params["w2"], params["b2"]
    output_n = params["output_n"]
    hid_p = w1_p.shape[1]
    out_p = w2_p.shape[1]
    dtype = x.dtype

    # Batch tile:
    #  * B <= cap  -> one tile covering the whole (8-aligned) batch: grid=(1,),
    #    minimal per-step overhead (the per-env-step RL case).
    #  * B  > cap  -> tiles that are a multiple of 256 rows (fills the
    #    2x256x256 MXU on v6e/v7x; 2x128 passes on v5e) so a short "parallel"
    #    grid overlaps DMA with compute and shards across v7x's two cores.
    cap = max(256, _round_up(block_batch, 256))
    tm = _round_up(B, 8) if B <= cap else cap
    b_p = _round_up(B, tm)

    # Only the batch dim may need padding (at most tm-1 rows); feature dim of x
    # stays at its true size.
    x_p = x if b_p == B else jnp.zeros((b_p, input_n), dtype).at[:B, :].set(x)

    grid = (b_p // tm,)

    y_p = pl.pallas_call(
        _linear_dqn_kernel,
        out_shape=jax.ShapeDtypeStruct((b_p, out_p), dtype),
        grid=grid,
        in_specs=[
            # x streamed per batch tile; last dim == full array dim (no lane
            # padding needed to satisfy the (8,128) rule).
            pl.BlockSpec((tm, input_n), lambda i: (i, 0)),
            # Weights / biases: constant index_map -> DMA'd once, VMEM-resident
            # across all grid steps.
            pl.BlockSpec((input_n, hid_p), lambda i: (0, 0)),
            pl.BlockSpec((1, hid_p), lambda i: (0, 0)),
            pl.BlockSpec((hid_p, out_p), lambda i: (0, 0)),
            pl.BlockSpec((1, out_p), lambda i: (0, 0)),
        ],
        # Lane-dense output tile (out_p multiple of 128 -> unmasked vst).
        out_specs=pl.BlockSpec((tm, out_p), lambda i: (i, 0)),
        compiler_params=pltpu.CompilerParams(
            # Batch tiles are independent -> parallel (2x on v7x megacore,
            # neutral on v5e/v6e).  No vmem_limit override: real footprint is
            # well under 1 MiB, defaults are ample on every generation.
            dimension_semantics=("parallel",),
        ),
    )(x_p, w1_p, b1_p, w2_p, b2_p)

    # Strip batch padding and output-lane padding.
    return y_p[:B, :output_n]


def init_linear_dqn_params(key, input_n, hidden_n, output_n, dtype=jnp.float32):
    """Deterministic init mimicking nn.Linear's U(-1/sqrt(fan_in), 1/sqrt(fan_in))."""
    k1, k2, k3, k4 = jax.random.split(key, 4)
    bound1 = 1.0 / jnp.sqrt(jnp.array(input_n, dtype))
    bound2 = 1.0 / jnp.sqrt(jnp.array(hidden_n, dtype))
    w1 = jax.random.uniform(k1, (input_n, hidden_n), dtype, -bound1, bound1)
    b1 = jax.random.uniform(k2, (1, hidden_n), dtype, -bound1, bound1)
    w2 = jax.random.uniform(k3, (hidden_n, output_n), dtype, -bound2, bound2)
    b2 = jax.random.uniform(k4, (1, output_n), dtype, -bound2, bound2)
    return w1, b1, w2, b2


if __name__ == "__main__":
    key = jax.random.PRNGKey(0)
    kx, kp = jax.random.split(key)

    # Snake DQN-ish shapes: 11-feature state, 256 hidden, 3 actions.
    batch, input_n, hidden_n, output_n = 256, 11, 256, 3

    x = jax.random.normal(kx, (batch, input_n), jnp.float32)
    w1, b1, w2, b2 = init_linear_dqn_params(kp, input_n, hidden_n, output_n)

    # One-time parameter prep (padding hoisted out of the forward path).
    params = prepare_linear_dqn_params(w1, b1, w2, b2)

    # B=256 <= block_batch -> single 256-row tile, grid=(1,).
    out = linear_dqn_forward(x, params, block_batch=512)
    out = jax.block_until_ready(out)

    # Reference check in plain JAX (same semantics as the PyTorch forward).
    # Note: MXU accumulation order differs from PyTorch, expect allclose-level
    # agreement only.
    ref = jnp.maximum(x @ w1 + b1, 0.0) @ w2 + b2
    assert out.shape == (batch, output_n)
    assert jnp.allclose(out, ref, atol=1e-5, rtol=1e-5)

    print("KERNEL_OK")
</pallas_src>

<mosaic_0001>
module attributes {stable_mosaic.version = 11 : i64} {
  func.func @_linear_dqn_kernel(%arg0: i32, %arg1: memref<256x11xf32, #tpu.memory_space<vmem>>, %arg2: memref<11x256xf32, #tpu.memory_space<vmem>>, %arg3: memref<1x256xf32, #tpu.memory_space<vmem>>, %arg4: memref<256x128xf32, #tpu.memory_space<vmem>>, %arg5: memref<1x128xf32, #tpu.memory_space<vmem>>, %arg6: memref<256x128xf32, #tpu.memory_space<vmem>>) attributes {dimension_semantics = [#tpu.dimension_semantics<parallel>], iteration_bounds = array<i64: 1>, scalar_prefetch = 0 : i64, scratch_operands = 0 : i64, tpu.core_type = #tpu.core_type<tc>, window_params = [{transform_indices = @transform_0, window_bounds = array<i64: 256, 11>}, {pipeline_mode = #tpu.pipeline_mode<synchronous>, transform_indices = @transform_1, window_bounds = array<i64: 11, 256>}, {pipeline_mode = #tpu.pipeline_mode<synchronous>, transform_indices = @transform_2, window_bounds = array<i64: 1, 256>}, {pipeline_mode = #tpu.pipeline_mode<synchronous>, transform_indices = @transform_3, window_bounds = array<i64: 256, 128>}, {pipeline_mode = #tpu.pipeline_mode<synchronous>, transform_indices = @transform_4, window_bounds = array<i64: 1, 128>}, {transform_indices = @transform_5, window_bounds = array<i64: 256, 128>}]} {
    %c0 = arith.constant 0 : index
    %c0_0 = arith.constant 0 : index
    %0 = vector.load %arg1[%c0, %c0_0] : memref<256x11xf32, #tpu.memory_space<vmem>>, vector<256x11xf32>
    %c0_1 = arith.constant 0 : index
    %c0_2 = arith.constant 0 : index
    %1 = vector.load %arg2[%c0_1, %c0_2] : memref<11x256xf32, #tpu.memory_space<vmem>>, vector<11x256xf32>
    %cst = arith.constant dense<0.000000e+00> : vector<256x256xf32>
    %2 = tpu.matmul %0, %1, %cst {dimension_numbers = #tpu.dot_dimension_numbers<[1], [0], [0], [1], [0, 0, 1, 1], [], []>} : vector<256x11xf32>, vector<11x256xf32>, vector<256x256xf32> -> vector<256x256xf32>
    %c0_3 = arith.constant 0 : index
    %c0_4 = arith.constant 0 : index
    %3 = vector.load %arg3[%c0_3, %c0_4] : memref<1x256xf32, #tpu.memory_space<vmem>>, vector<1x256xf32>
    %4 = vector.broadcast %3 : vector<1x256xf32> to vector<256x256xf32>
    %5 = arith.addf %2, %4 : vector<256x256xf32>
    %cst_5 = arith.constant 0.000000e+00 : f32
    %6 = vector.broadcast %cst_5 : f32 to vector<256x256xf32>
    %7 = arith.maximumf %5, %6 : vector<256x256xf32>
    %c0_6 = arith.constant 0 : index
    %c0_7 = arith.constant 0 : index
    %8 = vector.load %arg4[%c0_6, %c0_7] : memref<256x128xf32, #tpu.memory_space<vmem>>, vector<256x128xf32>
    %cst_8 = arith.constant dense<0.000000e+00> : vector<256x128xf32>
    %9 = tpu.matmul %7, %8, %cst_8 {dimension_numbers = #tpu.dot_dimension_numbers<[1], [0], [0], [1], [0, 0, 1, 1], [], []>} : vector<256x256xf32>, vector<256x128xf32>, vector<256x128xf32> -> vector<256x128xf32>
    %c0_9 = arith.constant 0 : index
    %c0_10 = arith.constant 0 : index
    %10 = vector.load %arg5[%c0_9, %c0_10] : memref<1x128xf32, #tpu.memory_space<vmem>>, vector<1x128xf32>
    %11 = vector.broadcast %10 : vector<1x128xf32> to vector<256x128xf32>
    %12 = arith.addf %9, %11 : vector<256x128xf32>
    %c0_11 = arith.constant 0 : index
    %c0_12 = arith.constant 0 : index
    %13 = vector.load %arg6[%c0_11, %c0_12] : memref<256x128xf32, #tpu.memory_space<vmem>>, vector<256x128xf32>
    tpu.vector_store %arg6[%c0_11, %c0_12], %12 {strides = array<i32>} : memref<256x128xf32, #tpu.memory_space<vmem>>, vector<256x128xf32>,
    return
  }
  func.func @transform_0(%arg0: i32) -> (i32, i32) {
    %c0_i32 = arith.constant 0 : i32
    %c0_i32_0 = arith.constant 0 : i32
    return %arg0, %c0_i32 : i32, i32
  }
  func.func @transform_1(%arg0: i32) -> (i32, i32) {
    %c0_i32 = arith.constant 0 : i32
    %c0_i32_0 = arith.constant 0 : i32
    %c0_i32_1 = arith.constant 0 : i32
    return %c0_i32, %c0_i32_0 : i32, i32
  }
  func.func @transform_2(%arg0: i32) -> (i32, i32) {
    %c0_i32 = arith.constant 0 : i32
    %c0_i32_0 = arith.constant 0 : i32
    %c0_i32_1 = arith.constant 0 : i32
    return %c0_i32, %c0_i32_0 : i32, i32
  }
  func.func @transform_3(%arg0: i32) -> (i32, i32) {
    %c0_i32 = arith.constant 0 : i32
    %c0_i32_0 = arith.constant 0 : i32
    %c0_i32_1 = arith.constant 0 : i32
    return %c0_i32, %c0_i32_0 : i32, i32
  }
  func.func @transform_4(%arg0: i32) -> (i32, i32) {
    %c0_i32 = arith.constant 0 : i32
    %c0_i32_0 = arith.constant 0 : i32
    %c0_i32_1 = arith.constant 0 : i32
    return %c0_i32, %c0_i32_0 : i32, i32
  }
  func.func @transform_5(%arg0: i32) -> (i32, i32) {
    %c0_i32 = arith.constant 0 : i32
    %c0_i32_0 = arith.constant 0 : i32
    return %arg0, %c0_i32 : i32, i32
  }
}

</mosaic_0001>

<bundles_post_ra>
// kernel: tpu_custom_call.1
= control target key start
LH: loop header
LB: loop body
LE: loop exit
PB: predicated region body
PF: predicated region fallthrough
CT: control target
= control target key end

     0   :  { %vm166_vm0 = vcmask 1042432   ;;  %v931_v4 = vmov 0.0   ;;  %vm69_vm1 = vcmask 89088   ;;  %s1472_s0 = inlined_call_operand.vmem [shape: f32[256,11], index: 0, kind: input, shape index: {}]   ;;  %s1473_s1 = inlined_call_operand.vmem [shape: f32[11,256], index: 1, kind: input, shape index: {}]   ;;  %s1474_s2 = inlined_call_operand.vmem [shape: f32[1,256], index: 2, kind: input, shape index: {}]   ;;  %s1475_s3 = inlined_call_operand.vmem [shape: f32[256,128], index: 3, kind: input, shape index: {}]   ;;  %s1476_s4 = inlined_call_operand.vmem [shape: f32[1,128], index: 4, kind: input, shape index: {}]   ;;  %s1477_s5 = inlined_call_operand.hbm [shape: f32[256,128], index: 5, kind: output, shape index: {}]  }
   0x1   :  { %v56_v0 = vld [vmem:[%s1473_s1 + $0x18] sm:$0x7]  ;;  %v55_v1 = vld [vmem:[%s1473_s1 + $0x10] sm:$0x7]  ;;  %v54_v2 = vld [vmem:[%s1473_s1 + $0x8] sm:$0xff]  ;;  %237 = vmatprep.mubr.f32.mxu0 %v931_v4  ;;  %841 = vmatprep.subr.mxu1 %v931_v4 }
   0x2   :  { %806 = vmatprep.subr.msk.mxu0 %vm166_vm0, %v56_v0  ;;  %v53_v3 = vld [vmem:[%s1473_s1] sm:$0xff]  ;;  %v22_v6 = vld [vmem:[%s1472_s0 + $0x8] sm:$0xff]  ;;  %v23_v7 = vld [vmem:[%s1472_s0 + $0x10] sm:$0xff] }
   0x3   :  { %807 = vmatpush1.msk.msra.mxu0 %vm166_vm0, %v55_v1  ;;  %v21_v5 = vld [vmem:[%s1472_s0] sm:$0xff]  ;;  %v509_v8 = vld [vmem:[%s1475_s3 + $0x78] sm:$0xff]  ;;  %v508_v9 = vld [vmem:[%s1475_s3 + $0x70] sm:$0xff] }
   0x4   :  { %203 = vmatprep.subr.mxu0 %v54_v2  ;;  %873 = vmatpush1.msra.mxu1 %v509_v8  ;;  %v24_v10 = vld [vmem:[%s1472_s0 + $0x18] sm:$0xff]  ;;  %v507_v11 = vld [vmem:[%s1475_s3 + $0x68] sm:$0xff]  ;;  %v506_v12 = vld [vmem:[%s1475_s3 + $0x60] sm:$0xff] }
   0x5   :  { %204 = vmatpush1.msra.mxu0 %v53_v3  ;;  %842 = vmatprep.subr.mxu1 %v931_v4  ;;  %v25_v13 = vld [vmem:[%s1472_s0 + $0x20] sm:$0xff]  ;;  %v505_v14 = vld [vmem:[%s1475_s3 + $0x58] sm:$0xff]  ;;  %v504_v15 = vld [vmem:[%s1475_s3 + $0x50] sm:$0xff] }
   0x6   :  { %808 = vmatmul.mubr.msk.f32.vlgmr.msra.gmra.mxu0 %vm69_vm1, %v21_v5  ;;  %533 = vmatprep.subr.mxu0 %v931_v4 }
   0x7   :  { %243 = vmatprep.mubr.f32.mxu0 %v931_v4  ;;  %534 = vmatpush1.msra.mxu0 %v509_v8 }
   0x8   :  { %535 = vmatprep.subr.mxu0 %v931_v4  ;;  %874 = vmatpush1.msra.mxu1 %v508_v9 }
   0x9   :  { %536 = vmatpush1.msra.mxu0 %v508_v9  ;;  %843 = vmatprep.subr.mxu1 %v931_v4 }
   0xa   :  { %809 = vmatmul.mubr.msk.f32.gmra.mxu0 %vm69_vm1, %v22_v6  ;;  %537 = vmatprep.subr.mxu0 %v931_v4 }
   0xb   :  { %249 = vmatprep.mubr.f32.mxu0 %v931_v4  ;;  %538 = vmatpush1.msra.mxu0 %v507_v11 }
   0xc   :  { %539 = vmatprep.subr.mxu0 %v931_v4  ;;  %875 = vmatpush1.msra.mxu1 %v507_v11 }
   0xd   :  { %540 = vmatpush1.msra.mxu0 %v506_v12 }
   0xe   :  { %810 = vmatmul.mubr.msk.f32.gmra.mxu0 %vm69_vm1, %v23_v7  ;;  %541 = vmatprep.subr.mxu0 %v931_v4 }
   0xf   :  { %255 = vmatprep.mubr.f32.mxu0 %v931_v4 }
  0x12   :  { %811 = vmatmul.mubr.msk.f32.gmra.mxu0 %vm69_vm1, %v24_v10 }
  0x13   :  { %261 = vmatprep.mubr.f32.mxu0 %v931_v4 }
  0x16   :  { %812 = vmatmul.mubr.msk.f32.gmra.mxu0 %vm69_vm1, %v25_v13 }
  0x17   :  { %10 = vsyncpa [#allocation3], 0  ;;  %267 = vmatprep.mubr.f32.mxu0 %v931_v4  ;;  %v26_v16 = vld [vmem:[%s1472_s0 + $0x28] sm:$0xff]  ;;  %542 = vmatpush1.msra.mxu0 %v505_v14  ;;  %v502_v18 = vld [vmem:[%s1475_s3 + $0x40] sm:$0xff]  ;;  %v59_v6 = vlaneseq }
  0x18   :  { %543 = vmatprep.subr.mxu0 %v931_v4  ;;  %v503_v17 = vld [vmem:[%s1475_s3 + $0x48] sm:$0xff]  ;;  %844 = vmatprep.subr.mxu1 %v931_v4  ;;  %v27_v19 = vld [vmem:[%s1472_s0 + $0x30] sm:$0xff]  ;;  %v501_v20 = vld [vmem:[%s1475_s3 + $0x38] sm:$0xff] }
  0x19   :  { %544 = vmatpush1.msra.mxu0 %v504_v15  ;;  %876 = vmatpush1.msra.mxu1 %v506_v12  ;;  %v500_v21 = vld [vmem:[%s1475_s3 + $0x30] sm:$0xff]  ;;  %v28_v22 = vld [vmem:[%s1472_s0 + $0x38] sm:$0xff]  ;;  %v499_v23 = vld [vmem:[%s1475_s3 + $0x28] sm:$0xff]  ;;  %v60_v7 = vshrl.u32 %v59_v6, 7 }
  0x1a   :  { %813 = vmatmul.mubr.msk.f32.gmra.mxu0 %vm69_vm1, %v26_v16  ;;  %545 = vmatprep.subr.mxu0 %v931_v4  ;;  %v498_v24 = vld [vmem:[%s1475_s3 + $0x20] sm:$0xff]  ;;  %v1078_v26 = vld [vmem:[%s1475_s3 + $0x18] sm:$0xff]  ;;  %v1086_v27 = vld [vmem:[%s1475_s3 + $0x10] sm:$0xff] }
  0x1b   :  { %273 = vmatprep.mubr.f32.mxu0 %v931_v4  ;;  %546 = vmatpush1.msra.mxu0 %v503_v17  ;;  %v29_v25 = vld [vmem:[%s1472_s0 + $0x40] sm:$0xff]  ;;  %v30_v28 = vld [vmem:[%s1472_s0 + $0x48] sm:$0xff]  ;;  %v31_v31 = vld [vmem:[%s1472_s0 + $0x50] sm:$0xff]  ;;  %v61_v8 = vsub.s32 0, %v60_v7  ;;  %v65_v10 = vsub.s32 1, %v60_v7 }
  0x1c   :  { %547 = vmatprep.subr.mxu0 %v931_v4  ;;  %845 = vmatprep.subr.mxu1 %v931_v4  ;;  %v1097_v29 = vld [vmem:[%s1475_s3 + $0x8] sm:$0xff]  ;;  %v1106_v30 = vld [vmem:[%s1475_s3] sm:$0xff]  ;;  %v1117_v32 = vld [vmem:[%s1475_s3 + $0xf8] sm:$0xff] }
  0x1d   :  { %548 = vmatpush1.msra.mxu0 %v502_v18  ;;  %877 = vmatpush1.msra.mxu1 %v505_v14  ;;  %v1126_v33 = vld [vmem:[%s1475_s3 + $0xf0] sm:$0xff]  ;;  %v32_v34 = vld [vmem:[%s1472_s0 + $0x58] sm:$0xff]  ;;  %v1137_v35 = vld [vmem:[%s1475_s3 + $0xe8] sm:$0xff] }
  0x1e   :  { %814 = vmatmul.mubr.msk.f32.gmra.mxu0 %vm69_vm1, %v27_v19  ;;  %549 = vmatprep.subr.mxu0 %v931_v4  ;;  %v1146_v36 = vld [vmem:[%s1475_s3 + $0xe0] sm:$0xff]  ;;  %v1157_v38 = vld [vmem:[%s1475_s3 + $0xd8] sm:$0xff]  ;;  %v1166_v39 = vld [vmem:[%s1475_s3 + $0xd0] sm:$0xff] }
  0x1f   :  { %279 = vmatprep.mubr.f32.mxu0 %v931_v4  ;;  %550 = vmatpush1.msra.mxu0 %v501_v20  ;;  %v33_v37 = vld [vmem:[%s1472_s0 + $0x60] sm:$0xff]  ;;  %v34_v40 = vld [vmem:[%s1472_s0 + $0x68] sm:$0xff]  ;;  %v35_v43 = vld [vmem:[%s1472_s0 + $0x70] sm:$0xff] }
  0x20   :  { %551 = vmatprep.subr.mxu0 %v931_v4  ;;  %846 = vmatprep.subr.mxu1 %v931_v4  ;;  %v1177_v41 = vld [vmem:[%s1475_s3 + $0xc8] sm:$0xff]  ;;  %v1186_v42 = vld [vmem:[%s1475_s3 + $0xc0] sm:$0xff]  ;;  %v1197_v44 = vld [vmem:[%s1475_s3 + $0xb8] sm:$0xff] }
  0x21   :  { %552 = vmatpush1.msra.mxu0 %v500_v21  ;;  %878 = vmatpush1.msra.mxu1 %v504_v15  ;;  %v1207_v45 = vld [vmem:[%s1475_s3 + $0xb0] sm:$0xff]  ;;  %v36_v46 = vld [vmem:[%s1472_s0 + $0x78] sm:$0xff]  ;;  %v1218_v47 = vld [vmem:[%s1475_s3 + $0xa8] sm:$0xff] }
  0x22   :  { %815 = vmatmul.mubr.msk.f32.gmra.mxu0 %vm69_vm1, %v28_v22  ;;  %553 = vmatprep.subr.mxu0 %v931_v4  ;;  %v1228_v48 = vld [vmem:[%s1475_s3 + $0xa0] sm:$0xff]  ;;  %v513_v50 = vld [vmem:[%s1475_s3 + $0x98] sm:$0xff]  ;;  %v38_v51 = vld [vmem:[%s1472_s0 + $0x88] sm:$0xff] }
  0x23   :  { %285 = vmatprep.mubr.f32.mxu0 %v931_v4  ;;  %554 = vmatpush1.msra.mxu0 %v499_v23  ;;  %v37_v49 = vld [vmem:[%s1472_s0 + $0x80] sm:$0xff]  ;;  %v512_v52 = vld [vmem:[%s1475_s3 + $0x90] sm:$0xff]  ;;  %v511_v53 = vld [vmem:[%s1475_s3 + $0x88] sm:$0xff] }
  0x24   :  { %555 = vmatprep.subr.mxu0 %v931_v4  ;;  %847 = vmatprep.subr.mxu1 %v931_v4  ;;  %v39_v54 = vld [vmem:[%s1472_s0 + $0x90] sm:$0xff]  ;;  %v510_v55 = vld [vmem:[%s1475_s3 + $0x80] sm:$0xff]  ;;  %v40_v56 = vld [vmem:[%s1472_s0 + $0x98] sm:$0xff] }
  0x25   :  { %556 = vmatpush1.msra.mxu0 %v498_v24  ;;  %879 = vmatpush1.msra.mxu1 %v503_v17  ;;  %v41_v57 = vld [vmem:[%s1472_s0 + $0xa0] sm:$0xff]  ;;  %v42_v58 = vld [vmem:[%s1472_s0 + $0xa8] sm:$0xff]  ;;  %v43_v59 = vld [vmem:[%s1472_s0 + $0xb0] sm:$0xff] }
  0x26   :  { %816 = vmatmul.mubr.msk.f32.gmra.mxu0 %vm69_vm1, %v29_v25  ;;  %557 = vmatprep.subr.mxu0 %v931_v4  ;;  %v44_v60 = vld [vmem:[%s1472_s0 + $0xb8] sm:$0xff]  ;;  %v45_v61 = vld [vmem:[%s1472_s0 + $0xc0] sm:$0xff]  ;;  %v46_v62 = vld [vmem:[%s1472_s0 + $0xc8] sm:$0xff] }
  0x27   :  { %291 = vmatprep.mubr.f32.mxu0 %v931_v4  ;;  %558 = vmatpush1.msra.mxu0 %v1078_v26  ;;  %v47_v63 = vld [vmem:[%s1472_s0 + $0xd0] sm:$0xff]  ;;  %v48_v0 = vld [vmem:[%s1472_s0 + $0xd8] sm:$0xff]  ;;  %v49_v1 = vld [vmem:[%s1472_s0 + $0xe0] sm:$0xff] }
  0x28   :  { %559 = vmatprep.subr.mxu0 %v931_v4  ;;  %848 = vmatprep.subr.mxu1 %v931_v4  ;;  %v50_v2 = vld [vmem:[%s1472_s0 + $0xe8] sm:$0xff]  ;;  %v51_v3 = vld [vmem:[%s1472_s0 + $0xf0] sm:$0xff]  ;;  %v52_v5 = vld [vmem:[%s1472_s0 + $0xf8] sm:$0xff] }
  0x29   :  { %560 = vmatpush1.msra.mxu0 %v1086_v27  ;;  %880 = vmatpush1.msra.mxu1 %v502_v18  ;;  %v57_v9 = vld [vmem:[%s1474_s2] sm:$0x3] }
  0x2a   :  { %817 = vmatmul.mubr.msk.f32.gmra.mxu0 %vm69_vm1, %v30_v28  ;;  %561 = vmatprep.subr.mxu0 %v931_v4  ;;  %v1364_v11 = vrot.slane %v57_v9, %v61_v8  ;;  %v1366_v12 = vrot.slane %v57_v9, %v65_v10 }
  0x2b   :  { %297 = vmatprep.mubr.f32.mxu0 %v931_v4  ;;  %562 = vmatpush1.msra.mxu0 %v1097_v29 }
  0x2c   :  { %563 = vmatprep.subr.mxu0 %v931_v4  ;;  %849 = vmatprep.subr.mxu1 %v931_v4 }
  0x2d   :  { %564 = vmatpush1.msra.mxu0 %v1106_v30  ;;  %881 = vmatpush1.msra.mxu1 %v501_v20 }
  0x2e   :  { %818 = vmatmul.mubr.msk.f32.gmra.mxu0 %vm69_vm1, %v31_v31  ;;  %565 = vmatprep.subr.mxu0 %v931_v4 }
  0x2f   :  { %303 = vmatprep.mubr.f32.mxu0 %v931_v4  ;;  %566 = vmatpush2.msra.mxu0 %v1117_v32 }
  0x30   :  { %567 = vmatprep.subr.mxu0 %v931_v4  ;;  %850 = vmatprep.subr.mxu1 %v931_v4 }
  0x31   :  { %568 = vmatpush2.msra.mxu0 %v1126_v33  ;;  %882 = vmatpush1.msra.mxu1 %v500_v21 }
  0x32   :  { %819 = vmatmul.mubr.msk.f32.gmra.mxu0 %vm69_vm1, %v32_v34  ;;  %569 = vmatprep.subr.mxu0 %v931_v4 }
  0x33   :  { %309 = vmatprep.mubr.f32.mxu0 %v931_v4  ;;  %570 = vmatpush2.msra.mxu0 %v1137_v35 }
  0x34   :  { %571 = vmatprep.subr.mxu0 %v931_v4  ;;  %851 = vmatprep.subr.mxu1 %v931_v4 }
  0x35   :  { %572 = vmatpush2.msra.mxu0 %v1146_v36  ;;  %883 = vmatpush1.msra.mxu1 %v499_v23 }
  0x36   :  { %820 = vmatmul.mubr.msk.f32.gmra.mxu0 %vm69_vm1, %v33_v37  ;;  %573 = vmatprep.subr.mxu0 %v931_v4 }
  0x37   :  { %315 = vmatprep.mubr.f32.mxu0 %v931_v4  ;;  %574 = vmatpush2.msra.mxu0 %v1157_v38 }
  0x38   :  { %575 = vmatprep.subr.mxu0 %v931_v4  ;;  %852 = vmatprep.subr.mxu1 %v931_v4 }
  0x39   :  { %576 = vmatpush2.msra.mxu0 %v1166_v39  ;;  %884 = vmatpush1.msra.mxu1 %v498_v24 }
  0x3a   :  { %821 = vmatmul.mubr.msk.f32.gmra.mxu0 %vm69_vm1, %v34_v40  ;;  %577 = vmatprep.subr.mxu0 %v931_v4 }
  0x3b   :  { %321 = vmatprep.mubr.f32.mxu0 %v931_v4  ;;  %578 = vmatpush2.msra.mxu0 %v1177_v41 }
  0x3c   :  { %579 = vmatprep.subr.mxu0 %v931_v4  ;;  %853 = vmatprep.subr.mxu1 %v931_v4 }
  0x3d   :  { %580 = vmatpush2.msra.mxu0 %v1186_v42  ;;  %885 = vmatpush1.msra.mxu1 %v1078_v26 }
  0x3e   :  { %822 = vmatmul.mubr.msk.f32.gmra.mxu0 %vm69_vm1, %v35_v43  ;;  %581 = vmatprep.subr.mxu0 %v931_v4 }
  0x3f   :  { %327 = vmatprep.mubr.f32.mxu0 %v931_v4  ;;  %582 = vmatpush2.msra.mxu0 %v1197_v44 }
  0x40   :  { %583 = vmatprep.subr.mxu0 %v931_v4  ;;  %854 = vmatprep.subr.mxu1 %v931_v4 }
  0x41   :  { %584 = vmatpush2.msra.mxu0 %v1207_v45  ;;  %886 = vmatpush1.msra.mxu1 %v1086_v27 }
  0x42   :  { %823 = vmatmul.mubr.msk.f32.gmra.mxu0 %vm69_vm1, %v36_v46  ;;  %585 = vmatprep.subr.mxu0 %v931_v4 }
  0x43   :  { %333 = vmatprep.mubr.f32.mxu0 %v931_v4  ;;  %586 = vmatpush2.msra.mxu0 %v1218_v47 }
  0x44   :  { %587 = vmatprep.subr.mxu0 %v931_v4  ;;  %855 = vmatprep.subr.mxu1 %v931_v4 }
  0x45   :  { %588 = vmatpush2.msra.mxu0 %v1228_v48  ;;  %887 = vmatpush1.msra.mxu1 %v1097_v29 }
  0x46   :  { %824 = vmatmul.mubr.msk.f32.gmra.mxu0 %vm69_vm1, %v37_v49  ;;  %589 = vmatprep.subr.mxu0 %v931_v4 }
  0x47   :  { %339 = vmatprep.mubr.f32.mxu0 %v931_v4  ;;  %590 = vmatpush2.msra.mxu0 %v513_v50 }
  0x48   :  { %856 = vmatprep.subr.mxu1 %v931_v4  ;;  %591 = vmatprep.subr.mxu0 %v931_v4 }
  0x49   :  { %888 = vmatpush1.msra.mxu1 %v1106_v30  ;;  %592 = vmatpush2.msra.mxu0 %v512_v52 }
  0x4a   :  { %825 = vmatmul.mubr.msk.f32.gmra.mxu0 %vm69_vm1, %v38_v51  ;;  %857 = vmatprep.subr.mxu1 %v931_v4 }
  0x4b   :  { %345 = vmatprep.mubr.f32.mxu0 %v931_v4  ;;  %593 = vmatprep.subr.mxu0 %v931_v4 }
  0x4c   :  { %889 = vmatpush2.msra.mxu1 %v1117_v32  ;;  %594 = vmatpush2.msra.mxu0 %v511_v53 }
  0x4d   :  { %858 = vmatprep.subr.mxu1 %v931_v4  ;;  %595 = vmatprep.subr.mxu0 %v931_v4 }
  0x4e   :  { %826 = vmatmul.mubr.msk.f32.gmra.mxu0 %vm69_vm1, %v39_v54  ;;  %890 = vmatpush2.msra.mxu1 %v1126_v33 }
  0x4f   :  { %351 = vmatprep.mubr.f32.mxu0 %v931_v4  ;;  %596 = vmatpush2.msra.mxu0 %v510_v55 }
  0x50   :  { %859 = vmatprep.subr.mxu1 %v931_v4 }
  0x51   :  { %891 = vmatpush2.msra.mxu1 %v1137_v35 }
  0x52   :  { %827 = vmatmul.mubr.msk.f32.gmra.mxu0 %vm69_vm1, %v40_v56  ;;  %860 = vmatprep.subr.mxu1 %v931_v4 }
  0x53   :  { %357 = vmatprep.mubr.f32.mxu0 %v931_v4  ;;  %892 = vmatpush2.msra.mxu1 %v1146_v36 }
  0x54   :  { %861 = vmatprep.subr.mxu1 %v931_v4 }
  0x55   :  { %893 = vmatpush2.msra.mxu1 %v1157_v38 }
  0x56   :  { %828 = vmatmul.mubr.msk.f32.gmra.mxu0 %vm69_vm1, %v41_v57  ;;  %862 = vmatprep.subr.mxu1 %v931_v4 }
  0x57   :  { %363 = vmatprep.mubr.f32.mxu0 %v931_v4  ;;  %894 = vmatpush2.msra.mxu1 %v1166_v39 }
  0x58   :  { %863 = vmatprep.subr.mxu1 %v931_v4 }
  0x59   :  { %895 = vmatpush2.msra.mxu1 %v1177_v41 }
  0x5a   :  { %829 = vmatmul.mubr.msk.f32.gmra.mxu0 %vm69_vm1, %v42_v58  ;;  %864 = vmatprep.subr.mxu1 %v931_v4 }
  0x5b   :  { %369 = vmatprep.mubr.f32.mxu0 %v931_v4  ;;  %896 = vmatpush2.msra.mxu1 %v1186_v42 }
  0x5c   :  { %865 = vmatprep.subr.mxu1 %v931_v4 }
  0x5d   :  { %897 = vmatpush2.msra.mxu1 %v1197_v44 }
  0x5e   :  { %830 = vmatmul.mubr.msk.f32.gmra.mxu0 %vm69_vm1, %v43_v59  ;;  %866 = vmatprep.subr.mxu1 %v931_v4 }
  0x5f   :  { %375 = vmatprep.mubr.f32.mxu0 %v931_v4  ;;  %898 = vmatpush2.msra.mxu1 %v1207_v45 }
  0x60   :  { %867 = vmatprep.subr.mxu1 %v931_v4 }
  0x61   :  { %899 = vmatpush2.msra.mxu1 %v1218_v47 }
  0x62   :  { %831 = vmatmul.mubr.msk.f32.gmra.mxu0 %vm69_vm1, %v44_v60  ;;  %868 = vmatprep.subr.mxu1 %v931_v4 }
  0x63   :  { %381 = vmatprep.mubr.f32.mxu0 %v931_v4  ;;  %900 = vmatpush2.msra.mxu1 %v1228_v48 }
  0x64   :  { %869 = vmatprep.subr.mxu1 %v931_v4 }
  0x65   :  { %901 = vmatpush2.msra.mxu1 %v513_v50 }
  0x66   :  { %832 = vmatmul.mubr.msk.f32.gmra.mxu0 %vm69_vm1, %v45_v61  ;;  %870 = vmatprep.subr.mxu1 %v931_v4 }
  0x67   :  { %387 = vmatprep.mubr.f32.mxu0 %v931_v4  ;;  %902 = vmatpush2.msra.mxu1 %v512_v52 }
  0x68   :  { %871 = vmatprep.subr.mxu1 %v931_v4 }
  0x69   :  { %903 = vmatpush2.msra.mxu1 %v511_v53 }
  0x6a   :  { %833 = vmatmul.mubr.msk.f32.gmra.mxu0 %vm69_vm1, %v46_v62  ;;  %872 = vmatprep.subr.mxu1 %v931_v4 }
  0x6b   :  { %393 = vmatprep.mubr.f32.mxu0 %v931_v4  ;;  %904 = vmatpush2.msra.mxu1 %v510_v55 }
  0x6e   :  { %834 = vmatmul.mubr.msk.f32.gmra.mxu0 %vm69_vm1, %v47_v63 }
  0x6f   :  { %399 = vmatprep.mubr.f32.mxu0 %v931_v4 }
  0x72   :  { %835 = vmatmul.mubr.msk.f32.gmra.mxu0 %vm69_vm1, %v48_v0 }
  0x73   :  { %405 = vmatprep.mubr.f32.mxu0 %v931_v4 }
  0x76   :  { %836 = vmatmul.mubr.msk.f32.gmra.mxu0 %vm69_vm1, %v49_v1 }
  0x77   :  { %411 = vmatprep.mubr.f32.mxu0 %v931_v4 }
  0x7a   :  { %837 = vmatmul.mubr.msk.f32.gmra.mxu0 %vm69_vm1, %v50_v2 }
  0x7b   :  { %417 = vmatprep.mubr.f32.mxu0 %v931_v4 }
  0x7e   :  { %838 = vmatmul.mubr.msk.f32.gmra.mxu0 %vm69_vm1, %v51_v3 }
  0x7f   :  { %423 = vmatprep.mubr.f32.mxu0 %v931_v4 }
  0x82   :  { %839 = vmatmul.mubr.msk.f32.gmra.mxu0 %vm69_vm1, %v52_v5 }
  0xc6   :  { %v239_v13 = vpop.f32.mrf.mxu0 }
  0xc7   :  { %v240_v4 = vadd.f32 %v239_v13, %v1364_v11 }
  0xc8   :  { %v241_v14 = vpop.f32.mrf.mxu0 }
  0xc9   :  { %v242_v15 = vadd.f32 %v241_v14, %v1366_v12  ;;  %v430_v18 = vmax.f32 %v240_v4, 0.0 }
  0xca   :  { %v245_v16 = vpop.f32.mrf.mxu0 }
  0xcb   :  { %v431_v17 = vmax.f32 %v242_v15, 0.0  ;;  %v246_v19 = vadd.f32 %v245_v16, %v1364_v11 }
  0xcc   :  { %v247_v20 = vpop.f32.mrf.mxu0 }
  0xcd   :  { %v248_v21 = vadd.f32 %v247_v20, %v1366_v12  ;;  %597 = vmatprep.mubr.f32.mxu0 %v431_v17  ;;  %v432_v24 = vmax.f32 %v246_v19, 0.0 }
  0xce   :  { %v251_v22 = vpop.f32.mrf.mxu0  ;;  %598 = vmatmul.mubr.f32.vlgmr.msra.gmra.mxu0 %v430_v18 }
  0xcf   :  { %v433_v23 = vmax.f32 %v248_v21, 0.0  ;;  %v252_v25 = vadd.f32 %v251_v22, %v1364_v11 }
  0xd0   :  { %v253_v26 = vpop.f32.mrf.mxu0 }
  0xd1   :  { %v254_v27 = vadd.f32 %v253_v26, %v1366_v12  ;;  %602 = vmatprep.mubr.f32.mxu0 %v433_v23  ;;  %v434_v30 = vmax.f32 %v252_v25, 0.0 }
  0xd2   :  { %v257_v28 = vpop.f32.mrf.mxu0  ;;  %603 = vmatmul.mubr.f32.gmra.mxu0 %v432_v24 }
  0xd3   :  { %v435_v29 = vmax.f32 %v254_v27, 0.0  ;;  %v258_v31 = vadd.f32 %v257_v28, %v1364_v11 }
  0xd4   :  { %v259_v32 = vpop.f32.mrf.mxu0 }
  0xd5   :  { %v260_v33 = vadd.f32 %v259_v32, %v1366_v12  ;;  %607 = vmatprep.mubr.f32.mxu0 %v435_v29  ;;  %v436_v36 = vmax.f32 %v258_v31, 0.0 }
  0xd6   :  { %v263_v34 = vpop.f32.mrf.mxu0  ;;  %608 = vmatmul.mubr.f32.gmra.mxu0 %v434_v30 }
  0xd7   :  { %v437_v35 = vmax.f32 %v260_v33, 0.0  ;;  %v264_v37 = vadd.f32 %v263_v34, %v1364_v11 }
  0xd8   :  { %v265_v38 = vpop.f32.mrf.mxu0 }
  0xd9   :  { %v266_v39 = vadd.f32 %v265_v38, %v1366_v12  ;;  %612 = vmatprep.mubr.f32.mxu0 %v437_v35  ;;  %v438_v42 = vmax.f32 %v264_v37, 0.0 }
  0xda   :  { %v269_v40 = vpop.f32.mrf.mxu0  ;;  %613 = vmatmul.mubr.f32.gmra.mxu0 %v436_v36 }
  0xdb   :  { %v439_v41 = vmax.f32 %v266_v39, 0.0  ;;  %v270_v43 = vadd.f32 %v269_v40, %v1364_v11 }
  0xdc   :  { %v271_v44 = vpop.f32.mrf.mxu0 }
  0xdd   :  { %v272_v45 = vadd.f32 %v271_v44, %v1366_v12  ;;  %617 = vmatprep.mubr.f32.mxu0 %v439_v41  ;;  %v440_v48 = vmax.f32 %v270_v43, 0.0 }
  0xde   :  { %v275_v46 = vpop.f32.mrf.mxu0  ;;  %618 = vmatmul.mubr.f32.gmra.mxu0 %v438_v42 }
  0xdf   :  { %v441_v47 = vmax.f32 %v272_v45, 0.0  ;;  %v276_v49 = vadd.f32 %v275_v46, %v1364_v11 }
  0xe0   :  { %v277_v50 = vpop.f32.mrf.mxu0 }
  0xe1   :  { %v278_v51 = vadd.f32 %v277_v50, %v1366_v12  ;;  %622 = vmatprep.mubr.f32.mxu0 %v441_v47  ;;  %v442_v54 = vmax.f32 %v276_v49, 0.0 }
  0xe2   :  { %v281_v52 = vpop.f32.mrf.mxu0  ;;  %623 = vmatmul.mubr.f32.gmra.mxu0 %v440_v48 }
  0xe3   :  { %v443_v53 = vmax.f32 %v278_v51, 0.0  ;;  %v282_v55 = vadd.f32 %v281_v52, %v1364_v11 }
  0xe4   :  { %v283_v56 = vpop.f32.mrf.mxu0 }
  0xe5   :  { %627 = vmatprep.mubr.f32.mxu0 %v443_v53  ;;  %v284_v57 = vadd.f32 %v283_v56, %v1366_v12  ;;  %v444_v60 = vmax.f32 %v282_v55, 0.0 }
  0xe6   :  { %v287_v58 = vpop.f32.mrf.mxu0  ;;  %628 = vmatmul.mubr.f32.gmra.mxu0 %v442_v54 }
  0xe7   :  { %v445_v59 = vmax.f32 %v284_v57, 0.0  ;;  %v288_v61 = vadd.f32 %v287_v58, %v1364_v11 }
  0xe8   :  { %v289_v62 = vpop.f32.mrf.mxu0 }
  0xe9   :  { %v290_v63 = vadd.f32 %v289_v62, %v1366_v12  ;;  %632 = vmatprep.mubr.f32.mxu1 %v445_v59  ;;  %v446_v2 = vmax.f32 %v288_v61, 0.0 }
  0xea   :  { %v293_v0 = vpop.f32.mrf.mxu0  ;;  %633 = vmatmul.mubr.f32.vlgmr.msra.gmra.mxu1 %v444_v60 }
  0xeb   :  { %v447_v1 = vmax.f32 %v290_v63, 0.0  ;;  %v294_v3 = vadd.f32 %v293_v0, %v1364_v11 }
  0xec   :  { %v295_v5 = vpop.f32.mrf.mxu0 }
  0xed   :  { %v296_v6 = vadd.f32 %v295_v5, %v1366_v12  ;;  %637 = vmatprep.mubr.f32.mxu1 %v447_v1  ;;  %v448_v9 = vmax.f32 %v294_v3, 0.0 }
  0xee   :  { %v299_v7 = vpop.f32.mrf.mxu0  ;;  %638 = vmatmul.mubr.f32.gmra.mxu1 %v446_v2 }
  0xef   :  { %v449_v8 = vmax.f32 %v296_v6, 0.0  ;;  %v300_v10 = vadd.f32 %v299_v7, %v1364_v11 }
  0xf0   :  { %v301_v13 = vpop.f32.mrf.mxu0 }
  0xf1   :  { %v302_v4 = vadd.f32 %v301_v13, %v1366_v12  ;;  %642 = vmatprep.mubr.f32.mxu1 %v449_v8  ;;  %v450_v16 = vmax.f32 %v300_v10, 0.0 }
  0xf2   :  { %v305_v14 = vpop.f32.mrf.mxu0  ;;  %643 = vmatmul.mubr.f32.gmra.mxu1 %v448_v9 }
  0xf3   :  { %v451_v15 = vmax.f32 %v302_v4, 0.0  ;;  %v306_v17 = vadd.f32 %v305_v14, %v1364_v11 }
  0xf4   :  { %v307_v18 = vpop.f32.mrf.mxu0 }
  0xf5   :  { %v308_v19 = vadd.f32 %v307_v18, %v1366_v12  ;;  %647 = vmatprep.mubr.f32.mxu1 %v451_v15  ;;  %v452_v22 = vmax.f32 %v306_v17, 0.0 }
  0xf6   :  { %v311_v20 = vpop.f32.mrf.mxu0  ;;  %648 = vmatmul.mubr.f32.gmra.mxu1 %v450_v16 }
  0xf7   :  { %v453_v21 = vmax.f32 %v308_v19, 0.0  ;;  %v312_v23 = vadd.f32 %v311_v20, %v1364_v11 }
  0xf8   :  { %v313_v24 = vpop.f32.mrf.mxu0 }
  0xf9   :  { %v314_v25 = vadd.f32 %v313_v24, %v1366_v12  ;;  %652 = vmatprep.mubr.f32.mxu1 %v453_v21  ;;  %v454_v28 = vmax.f32 %v312_v23, 0.0 }
  0xfa   :  { %v317_v26 = vpop.f32.mrf.mxu0  ;;  %653 = vmatmul.mubr.f32.gmra.mxu1 %v452_v22 }
  0xfb   :  { %v455_v27 = vmax.f32 %v314_v25, 0.0  ;;  %v318_v29 = vadd.f32 %v317_v26, %v1364_v11 }
  0xfc   :  { %v319_v30 = vpop.f32.mrf.mxu0 }
  0xfd   :  { %v320_v31 = vadd.f32 %v319_v30, %v1366_v12  ;;  %657 = vmatprep.mubr.f32.mxu1 %v455_v27  ;;  %v456_v34 = vmax.f32 %v318_v29, 0.0 }
  0xfe   :  { %v323_v32 = vpop.f32.mrf.mxu0  ;;  %658 = vmatmul.mubr.f32.gmra.mxu1 %v454_v28 }
  0xff   :  { %v457_v33 = vmax.f32 %v320_v31, 0.0  ;;  %v324_v35 = vadd.f32 %v323_v32, %v1364_v11 }
 0x100   :  { %v325_v36 = vpop.f32.mrf.mxu0 }
 0x101   :  { %v326_v37 = vadd.f32 %v325_v36, %v1366_v12  ;;  %662 = vmatprep.mubr.f32.mxu1 %v457_v33  ;;  %v458_v40 = vmax.f32 %v324_v35, 0.0 }
 0x102   :  { %v329_v38 = vpop.f32.mrf.mxu0  ;;  %663 = vmatmul.mubr.f32.gmra.mxu1 %v456_v34 }
 0x103   :  { %v459_v39 = vmax.f32 %v326_v37, 0.0  ;;  %v330_v41 = vadd.f32 %v329_v38, %v1364_v11 }
 0x104   :  { %v331_v42 = vpop.f32.mrf.mxu0 }
 0x105   :  { %v332_v43 = vadd.f32 %v331_v42, %v1366_v12  ;;  %667 = vmatprep.mubr.f32.mxu1 %v459_v39  ;;  %v460_v46 = vmax.f32 %v330_v41, 0.0 }
 0x106   :  { %v335_v44 = vpop.f32.mrf.mxu0  ;;  %668 = vmatmul.mubr.f32.gmra.mxu1 %v458_v40 }
 0x107   :  { %v461_v45 = vmax.f32 %v332_v43, 0.0  ;;  %v336_v47 = vadd.f32 %v335_v44, %v1364_v11 }
 0x108   :  { %v337_v48 = vpop.f32.mrf.mxu0 }
 0x109   :  { %v338_v49 = vadd.f32 %v337_v48, %v1366_v12  ;;  %672 = vmatprep.mubr.f32.mxu1 %v461_v45  ;;  %v462_v52 = vmax.f32 %v336_v47, 0.0 }
 0x10a   :  { %v341_v50 = vpop.f32.mrf.mxu0  ;;  %673 = vmatmul.mubr.f32.gmra.mxu1 %v460_v46 }
 0x10b   :  { %v463_v51 = vmax.f32 %v338_v49, 0.0  ;;  %v342_v53 = vadd.f32 %v341_v50, %v1364_v11 }
 0x10c   :  { %v343_v54 = vpop.f32.mrf.mxu0 }
 0x10d   :  { %v344_v55 = vadd.f32 %v343_v54, %v1366_v12  ;;  %677 = vmatprep.mubr.f32.mxu1 %v463_v51  ;;  %v464_v58 = vmax.f32 %v342_v53, 0.0 }
 0x10e   :  { %v347_v56 = vpop.f32.mrf.mxu0  ;;  %678 = vmatmul.mubr.f32.gmra.mxu1 %v462_v52 }
 0x10f   :  { %v465_v57 = vmax.f32 %v344_v55, 0.0  ;;  %v348_v59 = vadd.f32 %v347_v56, %v1364_v11 }
 0x110   :  { %v349_v60 = vpop.f32.mrf.mxu0 }
 0x111   :  { %v350_v61 = vadd.f32 %v349_v60, %v1366_v12  ;;  %682 = vmatprep.mubr.f32.mxu1 %v465_v57  ;;  %v466_v0 = vmax.f32 %v348_v59, 0.0 }
 0x112   :  { %v353_v62 = vpop.f32.mrf.mxu0  ;;  %683 = vmatmul.mubr.f32.gmra.mxu1 %v464_v58 }
 0x113   :  { %v467_v63 = vmax.f32 %v350_v61, 0.0  ;;  %v354_v1 = vadd.f32 %v353_v62, %v1364_v11 }
 0x114   :  { %v355_v2 = vpop.f32.mrf.mxu0 }
 0x115   :  { %v356_v3 = vadd.f32 %v355_v2, %v1366_v12  ;;  %687 = vmatprep.mubr.f32.mxu1 %v467_v63  ;;  %v468_v7 = vmax.f32 %v354_v1, 0.0 }
 0x116   :  { %v359_v5 = vpop.f32.mrf.mxu0  ;;  %688 = vmatmul.mubr.f32.gmra.mxu1 %v466_v0 }
 0x117   :  { %v469_v6 = vmax.f32 %v356_v3, 0.0  ;;  %v360_v8 = vadd.f32 %v359_v5, %v1364_v11 }
 0x118   :  { %v361_v9 = vpop.f32.mrf.mxu0 }
 0x119   :  { %v362_v10 = vadd.f32 %v361_v9, %v1366_v12  ;;  %692 = vmatprep.mubr.f32.mxu1 %v469_v6  ;;  %v470_v14 = vmax.f32 %v360_v8, 0.0 }
 0x11a   :  { %v365_v13 = vpop.f32.mrf.mxu0  ;;  %693 = vmatmul.mubr.f32.gmra.mxu1 %v468_v7 }
 0x11b   :  { %v471_v4 = vmax.f32 %v362_v10, 0.0  ;;  %v366_v15 = vadd.f32 %v365_v13, %v1364_v11 }
 0x11c   :  { %v367_v16 = vpop.f32.mrf.mxu0 }
 0x11d   :  { %v368_v17 = vadd.f32 %v367_v16, %v1366_v12  ;;  %697 = vmatprep.mubr.f32.mxu1 %v471_v4  ;;  %v472_v20 = vmax.f32 %v366_v15, 0.0 }
 0x11e   :  { %v371_v18 = vpop.f32.mrf.mxu0  ;;  %698 = vmatmul.mubr.f32.gmra.mxu1 %v470_v14 }
 0x11f   :  { %v473_v19 = vmax.f32 %v368_v17, 0.0  ;;  %v372_v21 = vadd.f32 %v371_v18, %v1364_v11  ;;  %v1435_v18 = vld [vmem:[%s1476_s4] ss:$0 sm:$0xff]  ;;  %s932_s4 = smov [#allocation2]  }
 0x120   :  { %v373_v22 = vpop.f32.mrf.mxu0  ;;  %s795_s25 = sshll.u32 %s932_s4, 4  ;;  %s796_s25 = int_to_ptr.vmem [resolvable:$true] %s795_s25 }
 0x121   :  { %v374_v23 = vadd.f32 %v373_v22, %v1366_v12  ;;  %702 = vmatprep.mubr.f32.mxu1 %v473_v19  ;;  %v474_v26 = vmax.f32 %v372_v21, 0.0  ;;  %s909_s3 = scalar_lea.vmem %s796_s25, 4096  ;;  %p914_p1 = scmp.lt.s32.totalorder %s796_s25, %s796_s25 }
 0x122   :  { %v377_v24 = vpop.f32.mrf.mxu0  ;;  %703 = vmatmul.mubr.f32.gmra.mxu1 %v472_v20  ;;  %p910_p0 = scmp.ne.s32.totalorder %s796_s25, %s909_s3  ;;  %p915_p2 = scmp.lt.s32.totalorder %s909_s3, %s909_s3 }
 0x123   :  { %v475_v25 = vmax.f32 %v374_v23, 0.0  ;;  %v378_v27 = vadd.f32 %v377_v24, %v1364_v11 }
 0x124   :  { %v379_v28 = vpop.f32.mrf.mxu0  ;;  %p916_p3 = por %p915_p2, %p914_p1 }
 0x125   :  { %v380_v29 = vadd.f32 %v379_v28, %v1366_v12  ;;  %707 = vmatprep.mubr.f32.mxu1 %v475_v25  ;;  %v476_v32 = vmax.f32 %v378_v27, 0.0 }
 0x126   :  { %v383_v30 = vpop.f32.mrf.mxu0  ;;  %708 = vmatmul.mubr.f32.gmra.mxu1 %v474_v26  ;;  %p917_p4 = pnand %p916_p3, %p910_p0 }
 0x127   :  { %v477_v31 = vmax.f32 %v380_v29, 0.0  ;;  %v384_v33 = vadd.f32 %v383_v30, %v1364_v11 }
 0x128   :  { %v385_v34 = vpop.f32.mrf.mxu0 }
 0x129   :  { %v386_v35 = vadd.f32 %v385_v34, %v1366_v12  ;;  %712 = vmatprep.mubr.f32.mxu1 %v477_v31  ;;  %v478_v38 = vmax.f32 %v384_v33, 0.0 }
 0x12a   :  { %v389_v36 = vpop.f32.mrf.mxu0  ;;  %713 = vmatmul.mubr.f32.gmra.mxu1 %v476_v32 }
 0x12b   :  { %v479_v37 = vmax.f32 %v386_v35, 0.0  ;;  %v390_v39 = vadd.f32 %v389_v36, %v1364_v11 }
 0x12c   :  { %v391_v40 = vpop.f32.mrf.mxu0 }
 0x12d   :  { %v392_v41 = vadd.f32 %v391_v40, %v1366_v12  ;;  %717 = vmatprep.mubr.f32.mxu1 %v479_v37  ;;  %v480_v44 = vmax.f32 %v390_v39, 0.0 }
 0x12e   :  { %v395_v42 = vpop.f32.mrf.mxu0  ;;  %718 = vmatmul.mubr.f32.gmra.mxu1 %v478_v38 }
 0x12f   :  { %v481_v43 = vmax.f32 %v392_v41, 0.0  ;;  %v396_v45 = vadd.f32 %v395_v42, %v1364_v11 }
 0x130   :  { %v397_v46 = vpop.f32.mrf.mxu0 }
 0x131   :  { %v398_v47 = vadd.f32 %v397_v46, %v1366_v12  ;;  %722 = vmatprep.mubr.f32.mxu1 %v481_v43  ;;  %v482_v50 = vmax.f32 %v396_v45, 0.0 }
 0x132   :  { %v401_v48 = vpop.f32.mrf.mxu0  ;;  %723 = vmatmul.mubr.f32.gmra.mxu1 %v480_v44 }
 0x133   :  { %v483_v49 = vmax.f32 %v398_v47, 0.0  ;;  %v402_v51 = vadd.f32 %v401_v48, %v1364_v11 }
 0x134   :  { %v403_v52 = vpop.f32.mrf.mxu0 }
 0x135   :  { %v404_v53 = vadd.f32 %v403_v52, %v1366_v12  ;;  %727 = vmatprep.mubr.f32.mxu1 %v483_v49  ;;  %v484_v56 = vmax.f32 %v402_v51, 0.0 }
 0x136   :  { %v407_v54 = vpop.f32.mrf.mxu0  ;;  %728 = vmatmul.mubr.f32.gmra.mxu1 %v482_v50 }
 0x137   :  { %v485_v55 = vmax.f32 %v404_v53, 0.0  ;;  %v408_v57 = vadd.f32 %v407_v54, %v1364_v11 }
 0x138   :  { %v409_v58 = vpop.f32.mrf.mxu0 }
 0x139   :  { %v410_v59 = vadd.f32 %v409_v58, %v1366_v12  ;;  %732 = vmatprep.mubr.f32.mxu1 %v485_v55  ;;  %v486_v62 = vmax.f32 %v408_v57, 0.0 }
 0x13a   :  { %v413_v60 = vpop.f32.mrf.mxu0  ;;  %733 = vmatmul.mubr.f32.gmra.mxu1 %v484_v56 }
 0x13b   :  { %v487_v61 = vmax.f32 %v410_v59, 0.0  ;;  %v414_v63 = vadd.f32 %v413_v60, %v1364_v11 }
 0x13c   :  { %v415_v0 = vpop.f32.mrf.mxu0 }
 0x13d   :  { %v416_v1 = vadd.f32 %v415_v0, %v1366_v12  ;;  %737 = vmatprep.mubr.f32.mxu1 %v487_v61  ;;  %v488_v5 = vmax.f32 %v414_v63, 0.0 }
 0x13e   :  { %v419_v2 = vpop.f32.mrf.mxu0  ;;  %738 = vmatmul.mubr.f32.gmra.mxu1 %v486_v62 }
 0x13f   :  { %v489_v3 = vmax.f32 %v416_v1, 0.0  ;;  %v420_v6 = vadd.f32 %v419_v2, %v1364_v11 }
 0x140   :  { %v421_v7 = vpop.f32.mrf.mxu0 }
 0x141   :  { %v422_v8 = vadd.f32 %v421_v7, %v1366_v12  ;;  %742 = vmatprep.mubr.f32.mxu1 %v489_v3  ;;  %v490_v13 = vmax.f32 %v420_v6, 0.0 }
 0x142   :  { %v425_v9 = vpop.f32.mrf.mxu0  ;;  %743 = vmatmul.mubr.f32.gmra.mxu1 %v488_v5 }
 0x143   :  { %v491_v10 = vmax.f32 %v422_v8, 0.0  ;;  %v426_v4 = vadd.f32 %v425_v9, %v1364_v11 }
 0x144   :  { %v427_v14 = vpop.f32.mrf.mxu0 }
 0x145   :  { %v428_v15 = vadd.f32 %v427_v14, %v1366_v12  ;;  %747 = vmatprep.mubr.f32.mxu1 %v491_v10  ;;  %v492_v17 = vmax.f32 %v426_v4, 0.0 }
 0x146   :  { %748 = vmatmul.mubr.f32.gmra.mxu1 %v490_v13 }
 0x147   :  { %v493_v16 = vmax.f32 %v428_v15, 0.0 }
 0x149   :  { %752 = vmatprep.mubr.f32.mxu1 %v493_v16 }
 0x14a   :  { %753 = vmatmul.mubr.f32.gmra.mxu1 %v492_v17 }
 0x18e   :  { %v599_v19 = vpop.f32.mrf.mxu0 }
 0x18f   :  { %v600_v20 = vadd.f32 %v1435_v18, %v599_v19 }
 0x190   :  { %v601_v21 = vpop.f32.mrf.mxu0 }
 0x191   :  { %758 = vst [vmem:[#allocation2] sm:$0xff] %v600_v20 }
 0x192   :  { %v604_v11 = vpop.f32.mrf.mxu0 }
 0x193   :  { %v605_v22 = vadd.f32 %v1435_v18, %v604_v11 }
 0x194   :  { %v606_v12 = vpop.f32.mrf.mxu0 }
 0x195   :  { %759 = vst [vmem:[#allocation2 + $0x8] sm:$0xff] %v605_v22 }
 0x196   :  { %v609_v23 = vpop.f32.mrf.mxu0 }
 0x197   :  { %v610_v24 = vadd.f32 %v1435_v18, %v609_v23 }
 0x198   :  { %v611_v25 = vpop.f32.mrf.mxu0 }
 0x199   :  { %760 = vst [vmem:[#allocation2 + $0x10] sm:$0xff] %v610_v24 }
 0x19a   :  { %v614_v26 = vpop.f32.mrf.mxu0 }
 0x19b   :  { %v615_v27 = vadd.f32 %v1435_v18, %v614_v26 }
 0x19c   :  { %v616_v28 = vpop.f32.mrf.mxu0 }
 0x19d   :  { %761 = vst [vmem:[#allocation2 + $0x18] sm:$0xff] %v615_v27 }
 0x19e   :  { %v619_v29 = vpop.f32.mrf.mxu0 }
 0x19f   :  { %v620_v30 = vadd.f32 %v1435_v18, %v619_v29 }
 0x1a0   :  { %v621_v31 = vpop.f32.mrf.mxu0 }
 0x1a1   :  { %762 = vst [vmem:[#allocation2 + $0x20] sm:$0xff] %v620_v30 }
 0x1a2   :  { %v624_v32 = vpop.f32.mrf.mxu0 }
 0x1a3   :  { %v625_v33 = vadd.f32 %v1435_v18, %v624_v32 }
 0x1a4   :  { %v626_v34 = vpop.f32.mrf.mxu0 }
 0x1a5   :  { %763 = vst [vmem:[#allocation2 + $0x28] sm:$0xff] %v625_v33 }
 0x1a6   :  { %v629_v35 = vpop.f32.mrf.mxu0 }
 0x1a7   :  { %v630_v36 = vadd.f32 %v1435_v18, %v629_v35 }
 0x1a8   :  { %v631_v37 = vpop.f32.mrf.mxu0 }
 0x1a9   :  { %764 = vst [vmem:[#allocation2 + $0x30] sm:$0xff] %v630_v36 }
 0x1aa   :  { %v634_v38 = vpop.f32.mrf.mxu1 }
 0x1ab   :  { %v635_v39 = vadd.f32 %v1435_v18, %v634_v38 }
 0x1ac   :  { %v636_v40 = vpop.f32.mrf.mxu1 }
 0x1ad   :  { %765 = vst [vmem:[#allocation2 + $0x38] sm:$0xff] %v635_v39 }
 0x1ae   :  { %v639_v41 = vpop.f32.mrf.mxu1 }
 0x1af   :  { %v640_v42 = vadd.f32 %v1435_v18, %v639_v41 }
 0x1b0   :  { %v641_v43 = vpop.f32.mrf.mxu1 }
 0x1b1   :  { %766 = vst [vmem:[#allocation2 + $0x40] sm:$0xff] %v640_v42 }
 0x1b2   :  { %v644_v44 = vpop.f32.mrf.mxu1 }
 0x1b3   :  { %v645_v45 = vadd.f32 %v1435_v18, %v644_v44 }
 0x1b4   :  { %v646_v46 = vpop.f32.mrf.mxu1 }
 0x1b5   :  { %767 = vst [vmem:[#allocation2 + $0x48] sm:$0xff] %v645_v45 }
 0x1b6   :  { %v649_v47 = vpop.f32.mrf.mxu1 }
 0x1b7   :  { %v650_v48 = vadd.f32 %v1435_v18, %v649_v47 }
 0x1b8   :  { %v651_v49 = vpop.f32.mrf.mxu1 }
 0x1b9   :  { %768 = vst [vmem:[#allocation2 + $0x50] sm:$0xff] %v650_v48 }
 0x1ba   :  { %v654_v50 = vpop.f32.mrf.mxu1 }
 0x1bb   :  { %v655_v51 = vadd.f32 %v1435_v18, %v654_v50 }
 0x1bc   :  { %v656_v52 = vpop.f32.mrf.mxu1 }
 0x1bd   :  { %769 = vst [vmem:[#allocation2 + $0x58] sm:$0xff] %v655_v51 }
 0x1be   :  { %v659_v53 = vpop.f32.mrf.mxu1 }
 0x1bf   :  { %v660_v54 = vadd.f32 %v1435_v18, %v659_v53 }
 0x1c0   :  { %v661_v55 = vpop.f32.mrf.mxu1 }
 0x1c1   :  { %770 = vst [vmem:[#allocation2 + $0x60] sm:$0xff] %v660_v54 }
 0x1c2   :  { %v664_v56 = vpop.f32.mrf.mxu1 }
 0x1c3   :  { %v665_v57 = vadd.f32 %v1435_v18, %v664_v56 }
 0x1c4   :  { %v666_v58 = vpop.f32.mrf.mxu1 }
 0x1c5   :  { %771 = vst [vmem:[#allocation2 + $0x68] sm:$0xff] %v665_v57 }
 0x1c6   :  { %v669_v59 = vpop.f32.mrf.mxu1 }
 0x1c7   :  { %v670_v60 = vadd.f32 %v1435_v18, %v669_v59 }
 0x1c8   :  { %v671_v61 = vpop.f32.mrf.mxu1 }
 0x1c9   :  { %772 = vst [vmem:[#allocation2 + $0x70] sm:$0xff] %v670_v60 }
 0x1ca   :  { %v674_v62 = vpop.f32.mrf.mxu1 }
 0x1cb   :  { %v675_v63 = vadd.f32 %v1435_v18, %v674_v62 }
 0x1cc   :  { %v676_v0 = vpop.f32.mrf.mxu1 }
 0x1cd   :  { %773 = vst [vmem:[#allocation2 + $0x78] sm:$0xff] %v675_v63 }
 0x1ce   :  { %v679_v1 = vpop.f32.mrf.mxu1 }
 0x1cf   :  { %v680_v2 = vadd.f32 %v1435_v18, %v679_v1 }
 0x1d0   :  { %v681_v3 = vpop.f32.mrf.mxu1 }
 0x1d1   :  { %774 = vst [vmem:[#allocation2 + $0x80] sm:$0xff] %v680_v2 }
 0x1d2   :  { %v684_v5 = vpop.f32.mrf.mxu1 }
 0x1d3   :  { %v685_v6 = vadd.f32 %v1435_v18, %v684_v5 }
 0x1d4   :  { %v686_v7 = vpop.f32.mrf.mxu1 }
 0x1d5   :  { %775 = vst [vmem:[#allocation2 + $0x88] sm:$0xff] %v685_v6 }
 0x1d6   :  { %v689_v8 = vpop.f32.mrf.mxu1 }
 0x1d7   :  { %v690_v9 = vadd.f32 %v1435_v18, %v689_v8 }
 0x1d8   :  { %v691_v10 = vpop.f32.mrf.mxu1 }
 0x1d9   :  { %776 = vst [vmem:[#allocation2 + $0x90] sm:$0xff] %v690_v9 }
 0x1da   :  { %v694_v13 = vpop.f32.mrf.mxu1 }
 0x1db   :  { %v695_v4 = vadd.f32 %v1435_v18, %v694_v13 }
 0x1dc   :  { %v696_v14 = vpop.f32.mrf.mxu1 }
 0x1dd   :  { %777 = vst [vmem:[#allocation2 + $0x98] sm:$0xff] %v695_v4 }
 0x1de   :  { %v699_v15 = vpop.f32.mrf.mxu1 }
 0x1df   :  { %v700_v16 = vadd.f32 %v1435_v18, %v699_v15 }
 0x1e0   :  { %v701_v17 = vpop.f32.mrf.mxu1 }
 0x1e1   :  { %778 = vst [vmem:[#allocation2 + $0xa0] sm:$0xff] %v700_v16 }
 0x1e2   :  { %v704_v19 = vpop.f32.mrf.mxu1 }
 0x1e3   :  { %v705_v20 = vadd.f32 %v1435_v18, %v704_v19 }
 0x1e4   :  { %v706_v21 = vpop.f32.mrf.mxu1 }
 0x1e5   :  { %779 = vst [vmem:[#allocation2 + $0xa8] sm:$0xff] %v705_v20 }
 0x1e6   :  { %v709_v11 = vpop.f32.mrf.mxu1 }
 0x1e7   :  { %v710_v22 = vadd.f32 %v1435_v18, %v709_v11 }
 0x1e8   :  { %v711_v12 = vpop.f32.mrf.mxu1 }
 0x1e9   :  { %780 = vst [vmem:[#allocation2 + $0xb0] sm:$0xff] %v710_v22 }
 0x1ea   :  { %v714_v23 = vpop.f32.mrf.mxu1 }
 0x1eb   :  { %v715_v24 = vadd.f32 %v1435_v18, %v714_v23 }
 0x1ec   :  { %v716_v25 = vpop.f32.mrf.mxu1 }
 0x1ed   :  { %781 = vst [vmem:[#allocation2 + $0xb8] sm:$0xff] %v715_v24 }
 0x1ee   :  { %v719_v26 = vpop.f32.mrf.mxu1 }
 0x1ef   :  { %v720_v27 = vadd.f32 %v1435_v18, %v719_v26 }
 0x1f0   :  { %v721_v28 = vpop.f32.mrf.mxu1 }
 0x1f1   :  { %782 = vst [vmem:[#allocation2 + $0xc0] sm:$0xff] %v720_v27 }
 0x1f2   :  { %v724_v29 = vpop.f32.mrf.mxu1 }
 0x1f3   :  { %v725_v30 = vadd.f32 %v1435_v18, %v724_v29 }
 0x1f4   :  { %v726_v31 = vpop.f32.mrf.mxu1 }
 0x1f5   :  { %783 = vst [vmem:[#allocation2 + $0xc8] sm:$0xff] %v725_v30 }
 0x1f6   :  { %v729_v32 = vpop.f32.mrf.mxu1 }
 0x1f7   :  { %v730_v33 = vadd.f32 %v1435_v18, %v729_v32 }
 0x1f8   :  { %v731_v34 = vpop.f32.mrf.mxu1 }
 0x1f9   :  { %784 = vst [vmem:[#allocation2 + $0xd0] sm:$0xff] %v730_v33 }
 0x1fa   :  { %v734_v35 = vpop.f32.mrf.mxu1 }
 0x1fb   :  { %v735_v36 = vadd.f32 %v1435_v18, %v734_v35 }
 0x1fc   :  { %v736_v37 = vpop.f32.mrf.mxu1 }
 0x1fd   :  { %785 = vst [vmem:[#allocation2 + $0xd8] sm:$0xff] %v735_v36 }
 0x1fe   :  { %v739_v38 = vpop.f32.mrf.mxu1 }
 0x1ff   :  { %v740_v39 = vadd.f32 %v1435_v18, %v739_v38 }
 0x200   :  { %v741_v40 = vpop.f32.mrf.mxu1 }
 0x201   :  { %786 = vst [vmem:[#allocation2 + $0xe0] sm:$0xff] %v740_v39 }
 0x202   :  { %v744_v41 = vpop.f32.mrf.mxu1 }
 0x203   :  { %v745_v42 = vadd.f32 %v1435_v18, %v744_v41 }
 0x204   :  { %v746_v43 = vpop.f32.mrf.mxu1 }
 0x205   :  { %787 = vst [vmem:[#allocation2 + $0xe8] sm:$0xff] %v745_v42 }
 0x206   :  { %v749_v44 = vpop.f32.mrf.mxu1 }
 0x207   :  { %v750_v45 = vadd.f32 %v1435_v18, %v749_v44 }
 0x208   :  { %v751_v46 = vpop.f32.mrf.mxu1 }
 0x209   :  { %788 = vst [vmem:[#allocation2 + $0xf0] sm:$0xff] %v750_v45 }
 0x20a   :  { %v754_v47 = vpop.f32.mrf.mxu1 }
 0x20b   :  { %v755_v48 = vadd.f32 %v1435_v18, %v754_v47 }
 0x20c   :  { %v756_v49 = vpop.f32.mrf.mxu1 }
 0x20d   :  { %789 = vst [vmem:[#allocation2 + $0xf8] sm:$0xff] %v755_v48 }
 0x20e   :  { %920 = shalt.err (!%p917_p4)
}
 0x20f   :  { %s933_s26 = smov 128   ;;  %s934_s27 = smov 8  }
 0x210   :  { %801 = dma.vmem_to_hbm [thread:$0]  %s796_s25, 4096, %s1477_s5, [#allocation3], %s933_s26, %s933_s26, %s934_s27  }
 0x211   :  { %929 = dma.done.wait [#allocation3], 4096  }
 0x212   :  { %930 = vsyncadd [#allocation3], 4294963200 }
 0x213   :  { %805 = vsyncpa [#allocation3], 1 }

</bundles_post_ra>
